<compile_context>
chip_gen: v7x
topology: tpu7x:2x2x1
jax: 0.10.0
libtpu: 0.0.40
codegen_flags: <defaults>
</compile_context>

<pallas_src>
import functools

import jax
import jax.numpy as jnp
from jax import lax
from jax.experimental import pallas as pl
from jax.experimental.pallas import tpu as pltpu


def _padded_tile_bytes(rows, cols, dtype):
    """VMEM bytes of one (rows, cols) tile after (sublane, 128) layout padding."""
    itemsize = jnp.dtype(dtype).itemsize
    sublane = {4: 8, 2: 16, 1: 32}.get(itemsize, 8)
    prows = -(-rows // sublane) * sublane
    pcols = -(-cols // 128) * 128
    return prows * pcols * itemsize


def _maxpool_kernel(x_ref, o_ref, *, k, oh, ow, h, w):
    """Max-pool one batch tile.

    x_ref: (tb, H, W)  input planes (W on lanes, H on sublanes).
    o_ref: (tb, OH, OW) pooled output.

    The unrolled loops are static and sized for the small pooled outputs this
    module produces (OH, OW <= ~a few dozen); ceil_mode's ragged last window is
    handled by clipping the slice bounds at the input edge.
    """
    out_rows = []
    for i in range(oh):                       # output rows (static unroll)
        lo = i * k
        hi = min(lo + k, h)                   # clip ragged last window (ceil_mode)
        hm = x_ref[:, lo, :]                  # (tb, W): read taps straight from ref
        for r in range(lo + 1, hi):
            hm = jnp.maximum(hm, x_ref[:, r, :])   # elementwise VPU vmax
        cols = []
        for j in range(ow):                   # output cols (static unroll)
            wlo = j * k
            whi = min(wlo + k, w)             # clip ragged last window (ceil_mode)
            seg = hm[:, wlo:whi]              # (tb, <=k) contiguous lane slice
            cols.append(jnp.max(seg, axis=1, keepdims=True))
        out_rows.append(cols[0] if ow == 1 else jnp.concatenate(cols, axis=1))
    out = jnp.stack(out_rows, axis=1)         # (tb, OH, OW)
    o_ref[...] = out.astype(o_ref.dtype)      # single full-tile store


def maxpool2d_ceil(x, kernel_size=3, stride=None, ceil_mode=True,
                   vmem_block_budget_bytes=8 << 20):
    """MaxPool2d matching torch.nn.MaxPool2d(kernel_size, ceil_mode=ceil_mode).

    Input layout NCHW; output (N, C, OH, OW). Pallas path requires
    stride == kernel_size (the module's configuration).
    """
    k = kernel_size
    s = k if stride is None else stride
    if s != k:
        # TODO(synk): general stride needs overlapping-window taps; the module
        # always uses stride == kernel_size, so only that path is implemented.
        raise NotImplementedError("Pallas path requires stride == kernel_size")

    N, C, H, W = x.shape
    if ceil_mode:
        OH = -(-(H - k) // s) + 1
        OW = -(-(W - k) // s) + 1
        # PyTorch drops a window whose start index lies outside the input.
        if (OH - 1) * s >= H:
            OH -= 1
        if (OW - 1) * s >= W:
            OW -= 1
    else:
        OH = (H - k) // s + 1
        OW = (W - k) // s + 1

    B = N * C
    xr = jnp.reshape(x, (B, H, W))            # contiguous reshape: no HBM pass

    # (sublane,128)-padded, double-buffered per-plane VMEM footprint (in + out).
    per_plane = 2 * (_padded_tile_bytes(H, W, x.dtype)
                     + _padded_tile_bytes(OH, OW, x.dtype))
    tb = max(1, min(B, vmem_block_budget_bytes // per_plane))
    grid = (pl.cdiv(B, tb),)                  # ragged last block handled by Pallas
    block_bytes = tb * per_plane

    compiler_kwargs = dict(dimension_semantics=("parallel",))
    if block_bytes > (8 << 20):
        # Single plane blew the default budget: raise the scoped-VMEM limit,
        # capped at 32 MiB which is safe on every generation (v7x has 64 MiB).
        # TODO(synk): spatial (H) tiling for planes too large even for 32 MiB.
        compiler_kwargs["vmem_limit_bytes"] = int(min(32 << 20,
                                                      block_bytes + (2 << 20)))

    kernel = functools.partial(_maxpool_kernel, k=k, oh=OH, ow=OW, h=H, w=W)
    out = pl.pallas_call(
        kernel,
        out_shape=jax.ShapeDtypeStruct((B, OH, OW), x.dtype),
        grid=grid,
        in_specs=[pl.BlockSpec((tb, H, W), lambda i: (i, 0, 0))],
        out_specs=pl.BlockSpec((tb, OH, OW), lambda i: (i, 0, 0)),
        compiler_params=pltpu.CompilerParams(**compiler_kwargs),
    )(xr)

    return jnp.reshape(out, (N, C, OH, OW))   # contiguous reshape: no HBM pass


class Pmaxnn:
    """JAX/Pallas equivalent of the PyTorch Pmaxnn module (no parameters)."""

    def __init__(self):
        self.kernel_size = 3
        self.ceil_mode = True

    def __call__(self, x):
        return maxpool2d_ceil(
            x, kernel_size=self.kernel_size, ceil_mode=self.ceil_mode
        )


if __name__ == "__main__":
    key = jax.random.PRNGKey(0)
    key_a, key_b = jax.random.split(key)

    model = Pmaxnn()
    fwd = jax.jit(model)          # fuse reshapes + pallas_call into one executable
    k = s = 3

    def torch_style_ref(x):
        n, c, h, w = x.shape
        oh = -(-(h - k) // s) + 1
        ow = -(-(w - k) // s) + 1
        return lax.reduce_window(
            x, -jnp.inf, lax.max,
            window_dimensions=(1, 1, k, k), window_strides=(1, 1, s, s),
            padding=[(0, 0), (0, 0), (0, (oh - 1) * s + k - h),
                     (0, (ow - 1) * s + k - w)],
        )

    # Case 1: the module's own shape — input reshaped to (-1, 1, 5, 5), batch=2.
    x1 = jax.random.normal(key_a, (2 * 1 * 5 * 5,), dtype=jnp.float32)
    x1 = jnp.reshape(x1, (-1, 1, 5, 5))       # (2, 1, 5, 5) NCHW
    out1 = jax.block_until_ready(fwd(x1))
    assert out1.shape == (2, 1, 2, 2), out1.shape
    assert jnp.allclose(out1, torch_style_ref(x1)), "mismatch vs reference (5x5)"

    # Case 2: small multi-channel shape exercising the batch-tiled layout.
    x2 = jax.random.normal(key_b, (2, 4, 16, 16), dtype=jnp.float32)
    out2 = jax.block_until_ready(fwd(x2))
    assert out2.shape == (2, 4, 6, 6), out2.shape
    assert jnp.allclose(out2, torch_style_ref(x2)), "mismatch vs reference (16x16)"

    print("KERNEL_OK")
</pallas_src>

<mosaic_0001>
module attributes {stable_mosaic.version = 11 : i64} {
  func.func @_maxpool_kernel(%arg0: i32, %arg1: memref<2x5x5xf32, #tpu.memory_space<vmem>>, %arg2: memref<2x2x2xf32, #tpu.memory_space<vmem>>) attributes {dimension_semantics = [#tpu.dimension_semantics<parallel>], iteration_bounds = array<i64: 1>, scalar_prefetch = 0 : i64, scratch_operands = 0 : i64, tpu.core_type = #tpu.core_type<tc>, window_params = [{transform_indices = @transform_0, window_bounds = array<i64: 2, 5, 5>}, {transform_indices = @transform_1, window_bounds = array<i64: 2, 2, 2>}]} {
    %c0 = arith.constant 0 : index
    %c0_0 = arith.constant 0 : index
    %c0_1 = arith.constant 0 : index
    %0 = vector.load %arg1[%c0, %c0_0, %c0_1] : memref<2x5x5xf32, #tpu.memory_space<vmem>>, vector<2x1x5xf32>
    %1 = vector.shape_cast %0 : vector<2x1x5xf32> to vector<2x5xf32>
    %c0_2 = arith.constant 0 : index
    %c1 = arith.constant 1 : index
    %c0_3 = arith.constant 0 : index
    %2 = vector.load %arg1[%c0_2, %c1, %c0_3] : memref<2x5x5xf32, #tpu.memory_space<vmem>>, vector<2x1x5xf32>
    %3 = vector.shape_cast %2 : vector<2x1x5xf32> to vector<2x5xf32>
    %4 = arith.maximumf %1, %3 : vector<2x5xf32>
    %c0_4 = arith.constant 0 : index
    %c2 = arith.constant 2 : index
    %c0_5 = arith.constant 0 : index
    %5 = vector.load %arg1[%c0_4, %c2, %c0_5] : memref<2x5x5xf32, #tpu.memory_space<vmem>>, vector<2x1x5xf32>
    %6 = vector.shape_cast %5 : vector<2x1x5xf32> to vector<2x5xf32>
    %7 = arith.maximumf %4, %6 : vector<2x5xf32>
    %8 = vector.extract_strided_slice %7 {offsets = [0, 0], sizes = [2, 3], strides = [1, 1]} : vector<2x5xf32> to vector<2x3xf32>
    %cst = arith.constant dense<0xFF800000> : vector<2xf32>
    %9 = vector.multi_reduction <maximumf>, %8, %cst [1] : vector<2x3xf32> to vector<2xf32>
    %10 = vector.shape_cast %9 : vector<2xf32> to vector<2x1xf32>
    %11 = vector.extract_strided_slice %7 {offsets = [0, 3], sizes = [2, 2], strides = [1, 1]} : vector<2x5xf32> to vector<2x2xf32>
    %cst_6 = arith.constant dense<0xFF800000> : vector<2xf32>
    %12 = vector.multi_reduction <maximumf>, %11, %cst_6 [1] : vector<2x2xf32> to vector<2xf32>
    %13 = vector.shape_cast %12 : vector<2xf32> to vector<2x1xf32>
    %14 = tpu.concatenate %10, %13 in 1 : vector<2x1xf32>, vector<2x1xf32> -> vector<2x2xf32>
    %c0_7 = arith.constant 0 : index
    %c3 = arith.constant 3 : index
    %c0_8 = arith.constant 0 : index
    %15 = vector.load %arg1[%c0_7, %c3, %c0_8] : memref<2x5x5xf32, #tpu.memory_space<vmem>>, vector<2x1x5xf32>
    %16 = vector.shape_cast %15 : vector<2x1x5xf32> to vector<2x5xf32>
    %c0_9 = arith.constant 0 : index
    %c4 = arith.constant 4 : index
    %c0_10 = arith.constant 0 : index
    %17 = vector.load %arg1[%c0_9, %c4, %c0_10] : memref<2x5x5xf32, #tpu.memory_space<vmem>>, vector<2x1x5xf32>
    %18 = vector.shape_cast %17 : vector<2x1x5xf32> to vector<2x5xf32>
    %19 = arith.maximumf %16, %18 : vector<2x5xf32>
    %20 = vector.extract_strided_slice %19 {offsets = [0, 0], sizes = [2, 3], strides = [1, 1]} : vector<2x5xf32> to vector<2x3xf32>
    %cst_11 = arith.constant dense<0xFF800000> : vector<2xf32>
    %21 = vector.multi_reduction <maximumf>, %20, %cst_11 [1] : vector<2x3xf32> to vector<2xf32>
    %22 = vector.shape_cast %21 : vector<2xf32> to vector<2x1xf32>
    %23 = vector.extract_strided_slice %19 {offsets = [0, 3], sizes = [2, 2], strides = [1, 1]} : vector<2x5xf32> to vector<2x2xf32>
    %cst_12 = arith.constant dense<0xFF800000> : vector<2xf32>
    %24 = vector.multi_reduction <maximumf>, %23, %cst_12 [1] : vector<2x2xf32> to vector<2xf32>
    %25 = vector.shape_cast %24 : vector<2xf32> to vector<2x1xf32>
    %26 = tpu.concatenate %22, %25 in 1 : vector<2x1xf32>, vector<2x1xf32> -> vector<2x2xf32>
    %27 = vector.shape_cast %14 : vector<2x2xf32> to vector<2x1x2xf32>
    %28 = vector.shape_cast %26 : vector<2x2xf32> to vector<2x1x2xf32>
    %29 = tpu.concatenate %27, %28 in 1 : vector<2x1x2xf32>, vector<2x1x2xf32> -> vector<2x2x2xf32>
    %c0_13 = arith.constant 0 : index
    %c0_14 = arith.constant 0 : index
    %c0_15 = arith.constant 0 : index
    %30 = vector.load %arg2[%c0_13, %c0_14, %c0_15] : memref<2x2x2xf32, #tpu.memory_space<vmem>>, vector<2x2x2xf32>
    tpu.vector_store %arg2[%c0_13, %c0_14, %c0_15], %29 {strides = array<i32>} : memref<2x2x2xf32, #tpu.memory_space<vmem>>, vector<2x2x2xf32>,
    return
  }
  func.func @transform_0(%arg0: i32) -> (i32, i32, i32) {
    %c0_i32 = arith.constant 0 : i32
    %c0_i32_0 = arith.constant 0 : i32
    %c0_i32_1 = arith.constant 0 : i32
    return %arg0, %c0_i32, %c0_i32_0 : i32, i32, i32
  }
  func.func @transform_1(%arg0: i32) -> (i32, i32, i32) {
    %c0_i32 = arith.constant 0 : i32
    %c0_i32_0 = arith.constant 0 : i32
    %c0_i32_1 = arith.constant 0 : i32
    return %arg0, %c0_i32, %c0_i32_0 : i32, i32, i32
  }
}

</mosaic_0001>

<bundles_post_ra>
// kernel: _unnamed_function_.1
= control target key start
LH: loop header
LB: loop body
LE: loop exit
PB: predicated region body
PF: predicated region fallthrough
CT: control target
= control target key end

     0   :  { %vm22_vm0 = vcmask 1041409   ;;  %vm25_vm1 = vcmask 17408   ;;  %s217_s0 = inlined_call_operand.vmem [shape: f32[2,5,5], index: 0, kind: input, shape index: {}]   ;;  %s218_s1 = inlined_call_operand.hbm [shape: f32[2,2,2], index: 1, kind: output, shape index: {}]  }
   0x1   :  { %v35_v0 = vld [vmem:[%s217_s0 + $0x3] sm:$0x1]  ;;  %v36_v1 = vld [vmem:[%s217_s0 + $0xb] sm:$0x1]  ;;  %v37_v2 = vld [vmem:[%s217_s0 + $0x4] sm:$0x1] }
   0x2   :  { %v38_v3 = vld [vmem:[%s217_s0 + $0xc] sm:$0x1]  ;;  %v9_v4 = vld [vmem:[%s217_s0] sm:$0x1]  ;;  %v39_v5 = vmax.f32 %v35_v0, %v37_v2  ;;  %v10_v7 = vld [vmem:[%s217_s0 + $0x8] sm:$0x1] }
   0x3   :  { %v40_v6 = vmax.f32 %v36_v1, %v38_v3  ;;  %v11_v8 = vld [vmem:[%s217_s0 + $0x1] sm:$0x1]  ;;  %v12_v9 = vld [vmem:[%s217_s0 + $0x9] sm:$0x1]  ;;  %v15_v12 = vld [vmem:[%s217_s0 + $0x2] sm:$0x1] }
   0x4   :  { %v13_v10 = vmax.f32 %v9_v4, %v11_v8  ;;  %v14_v11 = vmax.f32 %v10_v7, %v12_v9  ;;  %v16_v13 = vld [vmem:[%s217_s0 + $0xa] sm:$0x1] }
   0x5   :  { %v43_v14 = vrot.slane %v40_v6, 7 }
   0x6   :  { %6 = vsyncpa [#allocation3], 0  ;;  %v17_v15 = vmax.f32 %v13_v10, %v15_v12  ;;  %v18_v16 = vmax.f32 %v14_v11, %v16_v13  ;;  %vm29_vm2 = vcmask 33816   ;;  %v161_v24 = vmov 1966171168   ;;  %s162_s0 = smov [#allocation2]  }
   0x7   :  { %v44_v17 = vsel %vm22_vm0, %v43_v14, %v39_v5  ;;  %v55_v25 = vunpack.c.l.s4 %v161_v24  ;;  %v57_v26 = vlaneseq  ;;  %vm33_vm3 = vcmask 7168   ;;  %s122_s26 = sshll.u32 %s162_s0, 4  ;;  %s123_s26 = int_to_ptr.vmem [resolvable:$true] %s122_s26 }
   0x8   :  { %v46_v18 = vsel %vm25_vm1, %v44_v17, -inf  ;;  %v21_v19 = vrot.slane %v18_v16, 7  ;;  %v49_v21 = vsel %vm29_vm2, %v44_v17, -inf  ;;  %vm111_vm4 = vcmask 1040384   ;;  %s137_s27 = scalar_lea.vmem %s123_s26, 64  ;;  %p142_p1 = scmp.lt.s32.totalorder %s123_s26, %s123_s26 }
   0x9   :  { %47 = vmax.xlane.f32.xlu0 %v46_v18  ;;  %v56_v27 = vunpack.c.0.s8 %v55_v25  ;;  %v58_v28 = vshrl.u32 %v57_v26, 7  ;;  %vm114_vm5 = vcmask 9216   ;;  %p138_p0 = scmp.ne.s32.totalorder %s123_s26, %s137_s27  ;;  %p143_p2 = scmp.lt.s32.totalorder %s137_s27, %s137_s27 }
   0xa   :  { %v23_v20 = vsel %vm22_vm0, %v21_v19, %v17_v15 }
   0xb   :  { %v26_v22 = vsel %vm25_vm1, %v23_v20, -inf  ;;  %v30_v23 = vsel %vm29_vm2, %v23_v20, -inf  ;;  %v59_v30 = vsub.s32 %v56_v27, %v58_v28  ;;  %v103_v34 = vsub.s32 0, %v58_v28  ;;  %p144_p3 = por %p143_p2, %p142_p1 }
   0xc   :  { %27 = vmax.xlane.f32.xlu1 %v26_v22 }
   0xd   :  { %50 = vmax.xlane.f32.xlu0 %v49_v21  ;;  %p145_p4 = pnand %p144_p3, %p138_p0 }
  0x10   :  { %31 = vmax.xlane.f32.xlu1 %v30_v23 }
  0x96   :  { %v48_v29 = vpop.xlane.xlu0 %47 }
  0x99   :  { %v28_v31 = vpop.xlane.xlu1 %27 }
  0x9a   :  { %v51_v32 = vpop.xlane.xlu0 %50 }
  0x9b   :  { %v52_v33 = vsel %vm33_vm3, %v48_v29, %v51_v32 }
  0x9c   :  { %v85_v35 = vrot.slane %v52_v33, %v59_v30 }
  0x9d   :  { %v32_v36 = vpop.xlane.xlu1 %31 }
  0x9e   :  { %v86_v37 = vcombine.high %v85_v35, %v85_v35  ;;  %v93_v38 = vrot.slane %v85_v35, %v59_v30  ;;  %v34_v39 = vsel %vm33_vm3, %v28_v31, %v32_v36 }
  0x9f   :  { %v60_v40 = vrot.slane %v34_v39, %v59_v30 }
  0xa0   :  { %v100_v41 = vrot.slane %v86_v37, %v59_v30  ;;  %v104_v42 = vrot.slane %v93_v38, %v103_v34 }
  0xa1   :  { %v61_v43 = vcombine.high %v60_v40, %v60_v40  ;;  %v68_v44 = vrot.slane %v60_v40, %v59_v30 }
  0xa2   :  { %v108_v45 = vrot.slane %v100_v41, %v103_v34 }
  0xa3   :  { %v75_v46 = vrot.slane %v61_v43, %v59_v30  ;;  %v112_v47 = vsel %vm111_vm4, %v68_v44, %v104_v42 }
  0xa4   :  { %115 = vst.msk [vmem:[#allocation2] sm:$0x3] %vm114_vm5, %v112_v47 }
  0xa5   :  { %v113_v48 = vsel %vm111_vm4, %v75_v46, %v108_v45 }
  0xa6   :  { %116 = vst.msk [vmem:[#allocation2 + $0x2] sm:$0x3] %vm114_vm5, %v113_v48 }
  0xa7   :  { %148 = shalt.err (!%p145_p4)
}
  0xa8   :  { %s149_s30 = scalar_lea.hbm %s218_s1, 64 }
  0xa9   :  { %p150_p5 = scmp.ne.s32.totalorder %s218_s1, %s149_s30  ;;  %p153_p6 = scmp.lt.u32.totalorder %s149_s30, %s218_s1 }
  0xab   :  { %p155_p7 = pnand %p153_p6, %p150_p5 }
  0xad   :  { %158 = shalt.err (!%p155_p7)
}
  0xae   :  { %s163_s6 = smov 32   ;;  %s164_s7 = smov 2  }
  0xaf   :  { %128 = dma.vmem_to_hbm [thread:$0]  %s123_s26, 64, %s218_s1, [#allocation3], %s163_s6, %s163_s6, %s164_s7  }
  0xb0   :  { %159 = dma.done.wait [#allocation3], 64  }
  0xb1   :  { %160 = vsyncadd [#allocation3], 4294967232 }
  0xb2   :  { %132 = vsyncpa [#allocation3], 1 }

</bundles_post_ra>
